<compile_context>
chip_gen: v7x
topology: tpu7x:2x2x1
jax: 0.10.0
libtpu: 0.0.40
codegen_flags: <defaults>
</compile_context>

<pallas_src>
import functools

import jax
import jax.numpy as jnp
from jax.experimental import pallas as pl
from jax.experimental.pallas import tpu as pltpu

_LANE = 128      # vreg lane width: batch-tile granularity (last dim)
_SUBLANE = 8     # f32 sublane width: feature-dim padding target


def _round_up(x, m):
    return ((x + m - 1) // m) * m


def _mlp_kernel_t(x_ref, w1_ref, b1_ref, w2_ref, b2_ref, out_ref):
    # x_ref:   (nIn_p, tb)   activations, batch on lanes
    # w1_ref:  (nH_p, nIn_p) fc1 weight (transposed)
    # b1_ref:  (nH_p, 1)
    # w2_ref:  (nO_p, nH_p)  fc2 weight (transposed)
    # b2_ref:  (nO_p, 1)
    # out_ref: (nO_p, tb)
    # fc1 on the MXU with f32 accumulation.
    h = jnp.dot(w1_ref[...], x_ref[...], preferred_element_type=jnp.float32)
    # Bias-add + ReLU in f32 on the VPU; (nH_p,1) broadcasts along lanes.
    h = jnp.maximum(h + b1_ref[...], 0.0)
    # fc2: cast to weight dtype (no-op for f32; intended downcast for bf16).
    q = jnp.dot(w2_ref[...], h.astype(w2_ref.dtype),
                preferred_element_type=jnp.float32)
    out_ref[...] = (q + b2_ref[...]).astype(out_ref.dtype)


def prepare_params(w1, b1, w2, b2):
    """One-time (outside the training step) transpose + sublane padding of the
    fc1/fc2 parameters.  Zero padding is exact: padded hidden rows see bias 0
    -> relu(0)=0 -> multiplied by zero w2 columns; padded output rows are
    sliced off in net_forward."""
    nIn, nH = w1.shape
    nOut = w2.shape[1]
    nIn_p = _round_up(nIn, _SUBLANE)
    nH_p = _round_up(nH, _SUBLANE)
    nO_p = _round_up(nOut, _SUBLANE)

    w1_t = jnp.pad(w1.T, ((0, nH_p - nH), (0, nIn_p - nIn)))       # (nH_p, nIn_p)
    b1_t = jnp.pad(jnp.reshape(b1, (-1, 1)).astype(jnp.float32),
                   ((0, nH_p - nH), (0, 0)))                        # (nH_p, 1)
    w2_t = jnp.pad(w2.T, ((0, nO_p - nOut), (0, nH_p - nH)))        # (nO_p, nH_p)
    b2_t = jnp.pad(jnp.reshape(b2, (-1, 1)).astype(jnp.float32),
                   ((0, nO_p - nOut), (0, 0)))                      # (nO_p, 1)
    return w1_t, b1_t, w2_t, b2_t


def _choose_batch_tile(B, block_b):
    """Lane-aligned batch tile; at least 2 tiles whenever the padded batch
    allows it (keeps both v7x TensorCores busy), capped at block_b rows."""
    B_lane = _round_up(B, _LANE)
    if B_lane >= 2 * _LANE:
        tb = _round_up(-(-B_lane // 2), _LANE)   # ceil(B_lane/2) -> >= 2 tiles
    else:
        tb = B_lane
    tb = min(tb, max(_LANE, _round_up(block_b, _LANE)))
    B_p = _round_up(B_lane, tb)
    return tb, B_p


@functools.partial(jax.jit, static_argnames=("n_out", "block_b"))
def net_forward(st, w1_t, b1_t, w2_t, b2_t, *, n_out, block_b=2048):
    """Pallas forward for Net.  st: [B, nIn]; returns Q_val: [B, n_out]."""
    B, nIn = st.shape
    nH_p, nIn_p = w1_t.shape
    nO_p = w2_t.shape[0]
    assert nIn_p == _round_up(nIn, _SUBLANE)
    assert w2_t.shape == (nO_p, nH_p)
    assert b1_t.shape == (nH_p, 1) and b2_t.shape == (nO_p, 1)
    assert n_out <= nO_p

    tb, B_p = _choose_batch_tile(B, block_b)
    grid = (B_p // tb,)

    # Activations to batch-on-lanes layout (cheap/fusable: B*nIn*4 bytes).
    x_t = jnp.pad(st.T, ((0, nIn_p - nIn), (0, B_p - B)))

    flops = 2 * B_p * (nIn_p * nH_p + nH_p * nO_p)
    bytes_accessed = (
        x_t.size * x_t.dtype.itemsize
        + w1_t.size * w1_t.dtype.itemsize + b1_t.size * b1_t.dtype.itemsize
        + w2_t.size * w2_t.dtype.itemsize + b2_t.size * b2_t.dtype.itemsize
        + nO_p * B_p * st.dtype.itemsize)

    out_t = pl.pallas_call(
        _mlp_kernel_t,
        out_shape=jax.ShapeDtypeStruct((nO_p, B_p), st.dtype),
        grid_spec=pl.GridSpec(
            grid=grid,
            in_specs=[
                # activation tiles walk the batch (lane) axis
                pl.BlockSpec((nIn_p, tb), lambda i: (0, i)),
                # weights / biases: constant index_map -> resident in VMEM
                pl.BlockSpec((nH_p, nIn_p), lambda i: (0, 0)),
                pl.BlockSpec((nH_p, 1), lambda i: (0, 0)),
                pl.BlockSpec((nO_p, nH_p), lambda i: (0, 0)),
                pl.BlockSpec((nO_p, 1), lambda i: (0, 0)),
            ],
            out_specs=pl.BlockSpec((nO_p, tb), lambda i: (0, i)),
        ),
        compiler_params=pltpu.CompilerParams(
            dimension_semantics=("parallel",),   # v7x: batch tiles over 2 TCs
        ),
        cost_estimate=pl.CostEstimate(
            flops=flops, transcendentals=0, bytes_accessed=bytes_accessed),
    )(x_t, w1_t, b1_t, w2_t, b2_t)

    # strip feature + batch padding and return batch-major Q values
    return out_t[:n_out, :B].T


def init_params(key, nIn, nOut, nNeuron, dtype=jnp.float32):
    """Deterministic init mimicking torch.nn.Linear default (uniform ±1/sqrt(fan_in))."""
    k1, k2, k3, k4 = jax.random.split(key, 4)
    bound1 = 1.0 / (nIn ** 0.5)
    bound2 = 1.0 / (nNeuron ** 0.5)
    w1 = jax.random.uniform(k1, (nIn, nNeuron), dtype, -bound1, bound1)
    b1 = jax.random.uniform(k2, (1, nNeuron), dtype, -bound1, bound1)
    w2 = jax.random.uniform(k3, (nNeuron, nOut), dtype, -bound2, bound2)
    b2 = jax.random.uniform(k4, (1, nOut), dtype, -bound2, bound2)
    return w1, b1, w2, b2


def reference_forward(st, w1, b1, w2, b2):
    h = jnp.maximum(st @ w1 + b1, 0.0)
    return h @ w2 + b2


if __name__ == "__main__":
    key = jax.random.PRNGKey(0)
    k_x, k_p, k_x2 = jax.random.split(key, 3)

    # Small shapes consistent with the module: batch=8, nIn=16, nNeuron=32, nOut=4
    B, nIn, nNeuron, nOut = 8, 16, 32, 4
    st = jax.random.normal(k_x, (B, nIn), jnp.float32)
    w1, b1, w2, b2 = init_params(k_p, nIn, nOut, nNeuron)

    # One-time parameter layout prep (hoisted out of the per-step forward).
    params_t = prepare_params(w1, b1, w2, b2)
    jax.block_until_ready(params_t)

    q_val = net_forward(st, *params_t, n_out=nOut)
    jax.block_until_ready(q_val)
    q_ref = reference_forward(st, w1, b1, w2, b2)
    assert q_val.shape == (B, nOut)
    assert jnp.allclose(q_val, q_ref, atol=1e-5, rtol=1e-5)

    # Multi-tile / padded-batch path (grid > 1: exercises batch tiling, the
    # "parallel" megacore split on v7x, and lane/sublane padding logic).
    B2 = 1000
    st2 = jax.random.normal(k_x2, (B2, nIn), jnp.float32)
    q2 = net_forward(st2, *params_t, n_out=nOut, block_b=256)
    jax.block_until_ready(q2)
    q2_ref = reference_forward(st2, w1, b1, w2, b2)
    assert q2.shape == (B2, nOut)
    assert jnp.allclose(q2, q2_ref, atol=1e-5, rtol=1e-5)

    print("KERNEL_OK")
</pallas_src>

<mosaic_0001>
module attributes {stable_mosaic.version = 11 : i64} {
  func.func @_mlp_kernel_t(%arg0: i32, %arg1: memref<16x128xf32, #tpu.memory_space<vmem>>, %arg2: memref<32x16xf32, #tpu.memory_space<vmem>>, %arg3: memref<32x1xf32, #tpu.memory_space<vmem>>, %arg4: memref<8x32xf32, #tpu.memory_space<vmem>>, %arg5: memref<8x1xf32, #tpu.memory_space<vmem>>, %arg6: memref<8x128xf32, #tpu.memory_space<vmem>>) attributes {dimension_semantics = [#tpu.dimension_semantics<parallel>], iteration_bounds = array<i64: 1>, scalar_prefetch = 0 : i64, scratch_operands = 0 : i64, tpu.core_type = #tpu.core_type<tc>, window_params = [{transform_indices = @transform_0, window_bounds = array<i64: 16, 128>}, {pipeline_mode = #tpu.pipeline_mode<synchronous>, transform_indices = @transform_1, window_bounds = array<i64: 32, 16>}, {pipeline_mode = #tpu.pipeline_mode<synchronous>, transform_indices = @transform_2, window_bounds = array<i64: 32, 1>}, {pipeline_mode = #tpu.pipeline_mode<synchronous>, transform_indices = @transform_3, window_bounds = array<i64: 8, 32>}, {pipeline_mode = #tpu.pipeline_mode<synchronous>, transform_indices = @transform_4, window_bounds = array<i64: 8, 1>}, {transform_indices = @transform_5, window_bounds = array<i64: 8, 128>}]} {
    %c0 = arith.constant 0 : index
    %c0_0 = arith.constant 0 : index
    %0 = vector.load %arg2[%c0, %c0_0] : memref<32x16xf32, #tpu.memory_space<vmem>>, vector<32x16xf32>
    %c0_1 = arith.constant 0 : index
    %c0_2 = arith.constant 0 : index
    %1 = vector.load %arg1[%c0_1, %c0_2] : memref<16x128xf32, #tpu.memory_space<vmem>>, vector<16x128xf32>
    %cst = arith.constant dense<0.000000e+00> : vector<32x128xf32>
    %2 = tpu.matmul %0, %1, %cst {dimension_numbers = #tpu.dot_dimension_numbers<[1], [0], [0], [1], [0, 0, 1, 1], [], []>} : vector<32x16xf32>, vector<16x128xf32>, vector<32x128xf32> -> vector<32x128xf32>
    %c0_3 = arith.constant 0 : index
    %c0_4 = arith.constant 0 : index
    %3 = vector.load %arg3[%c0_3, %c0_4] : memref<32x1xf32, #tpu.memory_space<vmem>>, vector<32x1xf32>
    %4 = vector.broadcast %3 : vector<32x1xf32> to vector<32x128xf32>
    %5 = arith.addf %2, %4 : vector<32x128xf32>
    %cst_5 = arith.constant 0.000000e+00 : f32
    %6 = vector.broadcast %cst_5 : f32 to vector<32x128xf32>
    %7 = arith.maximumf %5, %6 : vector<32x128xf32>
    %c0_6 = arith.constant 0 : index
    %c0_7 = arith.constant 0 : index
    %8 = vector.load %arg4[%c0_6, %c0_7] : memref<8x32xf32, #tpu.memory_space<vmem>>, vector<8x32xf32>
    %cst_8 = arith.constant dense<0.000000e+00> : vector<8x128xf32>
    %9 = tpu.matmul %8, %7, %cst_8 {dimension_numbers = #tpu.dot_dimension_numbers<[1], [0], [0], [1], [0, 0, 1, 1], [], []>} : vector<8x32xf32>, vector<32x128xf32>, vector<8x128xf32> -> vector<8x128xf32>
    %c0_9 = arith.constant 0 : index
    %c0_10 = arith.constant 0 : index
    %10 = vector.load %arg5[%c0_9, %c0_10] : memref<8x1xf32, #tpu.memory_space<vmem>>, vector<8x1xf32>
    %11 = vector.broadcast %10 : vector<8x1xf32> to vector<8x128xf32>
    %12 = arith.addf %9, %11 : vector<8x128xf32>
    %c0_11 = arith.constant 0 : index
    %c0_12 = arith.constant 0 : index
    %13 = vector.load %arg6[%c0_11, %c0_12] : memref<8x128xf32, #tpu.memory_space<vmem>>, vector<8x128xf32>
    tpu.vector_store %arg6[%c0_11, %c0_12], %12 {strides = array<i32>} : memref<8x128xf32, #tpu.memory_space<vmem>>, vector<8x128xf32>,
    return
  }
  func.func @transform_0(%arg0: i32) -> (i32, i32) {
    %c0_i32 = arith.constant 0 : i32
    %c0_i32_0 = arith.constant 0 : i32
    return %c0_i32, %arg0 : i32, i32
  }
  func.func @transform_1(%arg0: i32) -> (i32, i32) {
    %c0_i32 = arith.constant 0 : i32
    %c0_i32_0 = arith.constant 0 : i32
    %c0_i32_1 = arith.constant 0 : i32
    return %c0_i32, %c0_i32_0 : i32, i32
  }
  func.func @transform_2(%arg0: i32) -> (i32, i32) {
    %c0_i32 = arith.constant 0 : i32
    %c0_i32_0 = arith.constant 0 : i32
    %c0_i32_1 = arith.constant 0 : i32
    return %c0_i32, %c0_i32_0 : i32, i32
  }
  func.func @transform_3(%arg0: i32) -> (i32, i32) {
    %c0_i32 = arith.constant 0 : i32
    %c0_i32_0 = arith.constant 0 : i32
    %c0_i32_1 = arith.constant 0 : i32
    return %c0_i32, %c0_i32_0 : i32, i32
  }
  func.func @transform_4(%arg0: i32) -> (i32, i32) {
    %c0_i32 = arith.constant 0 : i32
    %c0_i32_0 = arith.constant 0 : i32
    %c0_i32_1 = arith.constant 0 : i32
    return %c0_i32, %c0_i32_0 : i32, i32
  }
  func.func @transform_5(%arg0: i32) -> (i32, i32) {
    %c0_i32 = arith.constant 0 : i32
    %c0_i32_0 = arith.constant 0 : i32
    return %c0_i32, %arg0 : i32, i32
  }
}

</mosaic_0001>

<bundles_post_ra>
// kernel: net_forward.1
= control target key start
LH: loop header
LB: loop body
LE: loop exit
PB: predicated region body
PF: predicated region fallthrough
CT: control target
= control target key end

     0   :  { %vm50_vm0 = vcmask 130048   ;;  %v291_v3 = vmov 0   ;;  %v292_v13 = vmov 0.0|0.0   ;;  %vm293_vm1 = vmmov 0   ;;  %s368_s0 = inlined_call_operand.vmem [shape: f32[16,128], index: 0, kind: input, shape index: {}]   ;;  %s369_s1 = inlined_call_operand.vmem [shape: f32[32,16], index: 1, kind: input, shape index: {}]   ;;  %s370_s2 = inlined_call_operand.vmem [shape: f32[32,1], index: 2, kind: input, shape index: {}]   ;;  %s371_s4 = inlined_call_operand.vmem [shape: f32[8,1], index: 4, kind: input, shape index: {}]   ;;  %s372_s3 = inlined_call_operand.vmem [shape: f32[8,32], index: 3, kind: input, shape index: {}]   ;;  %s373_s5 = inlined_call_operand.vmem [shape: f32[8,128], index: 5, kind: output, shape index: {}]  }
   0x1   :  { %v24_v0 = vld [vmem:[%s368_s0] sm:$0xff]  ;;  %v25_v1 = vld [vmem:[%s368_s0 + $0x8] sm:$0xff]  ;;  %289 = vset.pattern.permute.xlu0 %v291_v3  ;;  %290 = vset.pattern.permute.xlu1 %v291_v3  ;;  %v28_v6 = vld [vmem:[%s370_s2 + $0x10] sm:$0xff]  ;;  %v294_v14 = vmov 0.0   ;;  %vm159_vm2 = vcmask 261120  }
   0x2   :  { %v20_v2 = vld [vmem:[%s369_s1] sm:$0xff]  ;;  %v275_v4 = vpack.c.bf16 %v25_v1, %v24_v0  ;;  %v21_v7 = vld [vmem:[%s369_s1 + $0x8] sm:$0xff]  ;;  %42 = vperm.xlu1 %290, %v28_v6   ;;  %v22_v9 = vld [vmem:[%s369_s1 + $0x10] sm:$0xff]  ;;  %279 = vmatprep.subr.bf16.mxu1 %v292_v13 }
   0x3   :  { %258 = vmatprep.mubr.msk.f32.mxu0 %vm50_vm0, %v20_v2  ;;  %v26_v5 = vld [vmem:[%s370_s2] sm:$0xff]  ;;  %v27_v8 = vld [vmem:[%s370_s2 + $0x8] sm:$0xff]  ;;  %v29_v10 = vld [vmem:[%s370_s2 + $0x18] sm:$0xff]  ;;  %272 = vmatprep.mubr.msk.f32.mxu1 %vm293_vm1, %v294_v14 }
   0x4   :  { %276 = vmatprep.subr.bf16.mxu0 %v275_v4  ;;  %32 = vperm.xlu0 %289, %v26_v5   ;;  %v23_v11 = vld [vmem:[%s369_s1 + $0x18] sm:$0xff]  ;;  %v153_v12 = vld [vmem:[%s371_s4] sm:$0xff] }
   0x5   :  { %278 = vmatpush3.bf16.msra.mxu0 %v275_v4  ;;  %v152_v33 = vld [vmem:[%s372_s3] sm:$0xff] }
   0x6   :  { %47 = vperm.xlu1 %290, %v29_v10  }
   0x8   :  { %259 = vmatmul.mubr.msk.f32.vlgmr.msra.gmra.mrb[0].mxu0 %vm50_vm0, %v21_v7  ;;  %37 = vperm.xlu0 %289, %v27_v8  }
   0x9   :  { %261 = vmatprep.mubr.msk.f32.mxu0 %vm50_vm0, %v22_v9 }
   0xc   :  { %262 = vmatmul.mubr.msk.f32.gmra.mrb[2].mxu0 %vm50_vm0, %v23_v11  ;;  %156 = vperm.xlu0 %289, %v153_v12  }
  0x81   :  { %v43_v16 = vpop.permute.xlu1 %42 }
  0x83   :  { %v33_v15 = vpop.permute.xlu0 %32 }
  0x85   :  { %v48_v23 = vpop.permute.xlu1 %47 }
  0x87   :  { %v38_v17 = vpop.permute.xlu0 %37 }
  0x8b   :  { %v157_v34 = vpop.permute.xlu0 %156 }
  0xdb   :  { %v260_v18 = vpop.f32.mrb[0].mxu0 }
  0xdc   :  { %v135_v19 = vadd.f32 %v260_v18, %v38_v17  ;;  %v129_v20 = vpop.f32.mrb[1].mxu0 }
  0xdd   :  { %v130_v21 = vadd.f32 %v129_v20, %v33_v15 }
  0xde   :  { %v149_v22 = vmax.f32 %v135_v19, 0.0 }
  0xdf   :  { %v148_v24 = vmax.f32 %v130_v21, 0.0  ;;  %v263_v25 = vpop.f32.mrb[2].mxu0 }
  0xe0   :  { %v145_v26 = vadd.f32 %v263_v25, %v48_v23  ;;  %v139_v27 = vpop.f32.mrb[3].mxu0 }
  0xe1   :  { %v140_v28 = vadd.f32 %v139_v27, %v43_v16  ;;  %v280_v29 = vpack.c.bf16 %v149_v22, %v148_v24 }
  0xe2   :  { %v151_v30 = vmax.f32 %v145_v26, 0.0 }
  0xe3   :  { %v150_v31 = vmax.f32 %v140_v28, 0.0  ;;  %281 = vmatpush3.bf16.msra.mxu1 %v280_v29 }
  0xe4   :  { %282 = vmatprep.subr.bf16.mxu1 %v292_v13 }
  0xe5   :  { %v283_v32 = vpack.c.bf16 %v151_v30, %v150_v31 }
  0xe7   :  { %284 = vmatpush3.bf16.msra.mxu1 %v283_v32 }
  0xea   :  { %273 = vmatmul.mubr.msk.f32.vlgmr.msra.gmra.mrb[0].mxu1 %vm159_vm2, %v152_v33 }
 0x1bd   :  { %v229_v35 = vpop.f32.mrb[0].mxu1 }
 0x1be   :  { %v230_v36 = vadd.f32 %v229_v35, %v157_v34  ;;  %v274_v37 = vpop.f32.mrb[1].mxu1 }
 0x1c0   :  { %233 = vst [vmem:[%s373_s5] sm:$0xff] %v230_v36 }

</bundles_post_ra>
